<compile_context>
chip_gen: v7x
topology: tpu7x:2x2x1
jax: 0.10.0
libtpu: 0.0.40
codegen_flags: <defaults>
</compile_context>

<pallas_src>
import jax
import jax.numpy as jnp
from jax.experimental import pallas as pl
from jax.experimental.pallas import tpu as pltpu

TB_MAX = 1024     # max batch-tile rows (per-tile VMEM at 1024 is still < 4 MiB double-buffered)
OUT_PAD = 128     # lane-dense padded class dimension (real classes = 10)
NUM_CLASSES = 10
NEG_PAD = -1e30   # bias value for padded logit lanes (f32 only -- overflows to -inf in bf16)


def _round_up(x, m):
    return ((x + m - 1) // m) * m


def _choose_batch_tiling(batch):
    """Return (tb, num_tiles, padded_batch).

    - padded_batch = tb * num_tiles, with at most 7 padded rows per tile (sublane granularity),
    - tb is a multiple of 8 and <= TB_MAX,
    - num_tiles >= 2 whenever there is more than one sublane of rows, so the "parallel"
      batch axis actually splits into balanced halves across v7x's two TensorCores.
    """
    padded8 = _round_up(max(batch, 1), 8)
    if padded8 <= 8:
        return padded8, 1, padded8
    num_tiles = max(2, pl.cdiv(padded8, TB_MAX))
    tb = _round_up(pl.cdiv(padded8, num_tiles), 8)
    return tb, num_tiles, tb * num_tiles


def mlp_logsoftmax_kernel(
    x_ref,
    w1_ref, b1_ref,
    w2_ref, b2_ref,
    w3_ref, b3_ref,
    w4_ref, b4_ref,
    w5_ref, b5_ref,
    o_ref,
):
    """One batch tile: 5 matmuls (bf16 MXU, f32 acc) + ReLU + log-softmax."""
    h = x_ref[...]  # (tb, F) float32

    # Hidden layers: Linear + ReLU.  Python-unrolled on purpose; shapes differ per layer
    # and unrolling gives the LLO scheduler slack to overlap the tiny tail matmuls.
    for w_ref, b_ref in ((w1_ref, b1_ref), (w2_ref, b2_ref),
                         (w3_ref, b3_ref), (w4_ref, b4_ref)):
        h = jnp.dot(h.astype(jnp.bfloat16), w_ref[...],
                    preferred_element_type=jnp.float32) + b_ref[...]
        h = jnp.maximum(h, 0.0)

    # Output layer: Linear (padded to OUT_PAD lanes), no ReLU.
    logits = jnp.dot(h.astype(jnp.bfloat16), w5_ref[...],
                     preferred_element_type=jnp.float32) + b5_ref[...]

    # Numerically stable LogSoftmax over the feature axis.  Padded lanes carry a huge
    # negative f32 bias, so they never win the max and contribute exp() == 0 to the sum.
    m = jnp.max(logits, axis=-1, keepdims=True)
    shifted = logits - m
    lse = jnp.log(jnp.sum(jnp.exp(shifted), axis=-1, keepdims=True))
    o_ref[...] = (shifted - lse).astype(o_ref.dtype)


@jax.jit
def my_simple_model_forward(x, params):
    """x: (B, input_size) float32.  params: list of (W_t, b_row) pairs.

    W_t is (in, out) bf16 (pre-transposed from PyTorch's (out, in)); b_row is (1, out) f32.
    The last layer is padded to OUT_PAD output lanes (zeros / NEG_PAD).
    Returns (B, 10) float32 log-probabilities.
    """
    batch, feat = x.shape

    # Adaptive batch tiling: pad only to sublane granularity (8), balanced tiles.
    tb, num_tiles, padded_batch = _choose_batch_tiling(batch)
    if padded_batch != batch:
        # Padded rows are zeros -> logits = bias -> finite log-softmax; sliced off below.
        x = jnp.pad(x, ((0, padded_batch - batch), (0, 0)))

    flat_args = [x]
    for w_t, b_row in params:
        flat_args.append(w_t)
        flat_args.append(b_row)

    # Activations/output: tiled over the batch grid.  Weights/biases: constant block
    # index -> fetched once, resident in VMEM across all batch tiles.
    x_spec = pl.BlockSpec((tb, feat), lambda i: (i, 0))
    const_specs = [pl.BlockSpec(a.shape, lambda i: (0, 0)) for a in flat_args[1:]]
    out_spec = pl.BlockSpec((tb, OUT_PAD), lambda i: (i, 0))

    out = pl.pallas_call(
        mlp_logsoftmax_kernel,
        out_shape=jax.ShapeDtypeStruct((padded_batch, OUT_PAD), jnp.float32),
        grid=(num_tiles,),
        in_specs=[x_spec] + const_specs,
        out_specs=out_spec,
        compiler_params=pltpu.CompilerParams(
            dimension_semantics=("parallel",),   # shard balanced batch tiles across TCs (v7x)
        ),
    )(*flat_args)

    return out[:batch, :NUM_CLASSES]


def init_params(key, input_size):
    """Deterministic init mimicking PyTorch nn.Linear defaults.

    Returns list of (W_transposed (in, out) bf16, bias (1, out) f32).  The final layer
    is padded from 10 to OUT_PAD output lanes (zero weights, NEG_PAD bias).
    """
    dims = [input_size,
            input_size // 2,
            input_size // 4,
            input_size // 8,
            input_size // 16,
            NUM_CLASSES]
    params = []
    for i in range(len(dims) - 1):
        fan_in, fan_out = dims[i], dims[i + 1]
        key, kw, kb = jax.random.split(key, 3)
        bound = 1.0 / jnp.sqrt(jnp.float32(fan_in))
        w_t = jax.random.uniform(kw, (fan_in, fan_out), jnp.float32, -bound, bound)
        b = jax.random.uniform(kb, (1, fan_out), jnp.float32, -bound, bound)

        if i == len(dims) - 2:  # pad final layer to lane-dense OUT_PAD columns
            w_t = jnp.pad(w_t, ((0, 0), (0, OUT_PAD - fan_out)))
            b = jnp.pad(b, ((0, 0), (0, OUT_PAD - fan_out)),
                        constant_values=NEG_PAD)

        params.append((w_t.astype(jnp.bfloat16), b.astype(jnp.float32)))
    return params


def reference_forward(x, params):
    """Plain-JAX reference with identical bf16-weight / f32-accumulate numerics."""
    # TODO(synk): bf16 weights deviate from PyTorch's f32 nn.Linear numerics; this reference
    # checks the Pallas kernel against the same bf16/f32-acc recipe, not bit-exact PyTorch.
    h = x
    for w_t, b in params[:-1]:
        h = jnp.dot(h.astype(jnp.bfloat16), w_t,
                    preferred_element_type=jnp.float32) + b
        h = jnp.maximum(h, 0.0)
    w5, b5 = params[-1]
    logits = jnp.dot(h.astype(jnp.bfloat16), w5,
                     preferred_element_type=jnp.float32) + b5
    logits = logits[:, :NUM_CLASSES]
    return jax.nn.log_softmax(logits, axis=-1)


if __name__ == "__main__":
    key = jax.random.PRNGKey(0)
    key, kx1, kx2, kp = jax.random.split(key, 4)

    input_size = 256   # divisible by 16 so all hidden dims are integral
    params = init_params(kp, input_size)

    # Case 1: batch not a multiple of 8 and > 1 sublane -> 2 balanced tiles of 152 rows.
    # Case 2: tiny batch -> single 8-row tile path.
    for kx, batch in ((kx1, 300), (kx2, 6)):
        x = jax.random.normal(kx, (batch, input_size), jnp.float32)

        out = my_simple_model_forward(x, params)
        out = jax.block_until_ready(out)

        # Sanity: output is (batch, 10) log-probabilities (rows sum to 1 after exp).
        assert out.shape == (batch, NUM_CLASSES), out.shape
        row_sums = jnp.exp(out).sum(axis=1)
        assert jnp.allclose(row_sums, jnp.ones_like(row_sums), atol=1e-4)

        # Match the plain-JAX reference (same bf16 weights, f32 accumulation).
        ref = reference_forward(x, params)
        assert jnp.allclose(out, ref, atol=2e-3, rtol=2e-3)

    print("KERNEL_OK")
</pallas_src>

<mosaic_0001>
module attributes {stable_mosaic.version = 11 : i64} {
  func.func @mlp_logsoftmax_kernel(%arg0: i32, %arg1: memref<152x256xf32, #tpu.memory_space<vmem>>, %arg2: memref<256x128xbf16, #tpu.memory_space<vmem>>, %arg3: memref<1x128xf32, #tpu.memory_space<vmem>>, %arg4: memref<128x64xbf16, #tpu.memory_space<vmem>>, %arg5: memref<1x64xf32, #tpu.memory_space<vmem>>, %arg6: memref<64x32xbf16, #tpu.memory_space<vmem>>, %arg7: memref<1x32xf32, #tpu.memory_space<vmem>>, %arg8: memref<32x16xbf16, #tpu.memory_space<vmem>>, %arg9: memref<1x16xf32, #tpu.memory_space<vmem>>, %arg10: memref<16x128xbf16, #tpu.memory_space<vmem>>, %arg11: memref<1x128xf32, #tpu.memory_space<vmem>>, %arg12: memref<152x128xf32, #tpu.memory_space<vmem>>) attributes {dimension_semantics = [#tpu.dimension_semantics<parallel>], iteration_bounds = array<i64: 2>, scalar_prefetch = 0 : i64, scratch_operands = 0 : i64, tpu.core_type = #tpu.core_type<tc>, window_params = [{transform_indices = @transform_0, window_bounds = array<i64: 152, 256>}, {pipeline_mode = #tpu.pipeline_mode<synchronous>, transform_indices = @transform_1, window_bounds = array<i64: 256, 128>}, {pipeline_mode = #tpu.pipeline_mode<synchronous>, transform_indices = @transform_2, window_bounds = array<i64: 1, 128>}, {pipeline_mode = #tpu.pipeline_mode<synchronous>, transform_indices = @transform_3, window_bounds = array<i64: 128, 64>}, {pipeline_mode = #tpu.pipeline_mode<synchronous>, transform_indices = @transform_4, window_bounds = array<i64: 1, 64>}, {pipeline_mode = #tpu.pipeline_mode<synchronous>, transform_indices = @transform_5, window_bounds = array<i64: 64, 32>}, {pipeline_mode = #tpu.pipeline_mode<synchronous>, transform_indices = @transform_6, window_bounds = array<i64: 1, 32>}, {pipeline_mode = #tpu.pipeline_mode<synchronous>, transform_indices = @transform_7, window_bounds = array<i64: 32, 16>}, {pipeline_mode = #tpu.pipeline_mode<synchronous>, transform_indices = @transform_8, window_bounds = array<i64: 1, 16>}, {pipeline_mode = #tpu.pipeline_mode<synchronous>, transform_indices = @transform_9, window_bounds = array<i64: 16, 128>}, {pipeline_mode = #tpu.pipeline_mode<synchronous>, transform_indices = @transform_10, window_bounds = array<i64: 1, 128>}, {transform_indices = @transform_11, window_bounds = array<i64: 152, 128>}]} {
    %c0 = arith.constant 0 : index
    %c0_0 = arith.constant 0 : index
    %0 = vector.load %arg1[%c0, %c0_0] : memref<152x256xf32, #tpu.memory_space<vmem>>, vector<152x256xf32>
    %1 = arith.truncf %0 : vector<152x256xf32> to vector<152x256xbf16>
    %c0_1 = arith.constant 0 : index
    %c0_2 = arith.constant 0 : index
    %2 = vector.load %arg2[%c0_1, %c0_2] : memref<256x128xbf16, #tpu.memory_space<vmem>>, vector<256x128xbf16>
    %cst = arith.constant dense<0.000000e+00> : vector<152x128xf32>
    %3 = tpu.matmul %1, %2, %cst {dimension_numbers = #tpu.dot_dimension_numbers<[1], [0], [0], [1], [0, 0, 1, 1], [], []>} : vector<152x256xbf16>, vector<256x128xbf16>, vector<152x128xf32> -> vector<152x128xf32>
    %c0_3 = arith.constant 0 : index
    %c0_4 = arith.constant 0 : index
    %4 = vector.load %arg3[%c0_3, %c0_4] : memref<1x128xf32, #tpu.memory_space<vmem>>, vector<1x128xf32>
    %5 = vector.broadcast %4 : vector<1x128xf32> to vector<152x128xf32>
    %6 = arith.addf %3, %5 : vector<152x128xf32>
    %cst_5 = arith.constant 0.000000e+00 : f32
    %7 = vector.broadcast %cst_5 : f32 to vector<152x128xf32>
    %8 = arith.maximumf %6, %7 : vector<152x128xf32>
    %9 = arith.truncf %8 : vector<152x128xf32> to vector<152x128xbf16>
    %c0_6 = arith.constant 0 : index
    %c0_7 = arith.constant 0 : index
    %10 = vector.load %arg4[%c0_6, %c0_7] : memref<128x64xbf16, #tpu.memory_space<vmem>>, vector<128x64xbf16>
    %cst_8 = arith.constant dense<0.000000e+00> : vector<152x64xf32>
    %11 = tpu.matmul %9, %10, %cst_8 {dimension_numbers = #tpu.dot_dimension_numbers<[1], [0], [0], [1], [0, 0, 1, 1], [], []>} : vector<152x128xbf16>, vector<128x64xbf16>, vector<152x64xf32> -> vector<152x64xf32>
    %c0_9 = arith.constant 0 : index
    %c0_10 = arith.constant 0 : index
    %12 = vector.load %arg5[%c0_9, %c0_10] : memref<1x64xf32, #tpu.memory_space<vmem>>, vector<1x64xf32>
    %13 = vector.broadcast %12 : vector<1x64xf32> to vector<152x64xf32>
    %14 = arith.addf %11, %13 : vector<152x64xf32>
    %cst_11 = arith.constant 0.000000e+00 : f32
    %15 = vector.broadcast %cst_11 : f32 to vector<152x64xf32>
    %16 = arith.maximumf %14, %15 : vector<152x64xf32>
    %17 = arith.truncf %16 : vector<152x64xf32> to vector<152x64xbf16>
    %c0_12 = arith.constant 0 : index
    %c0_13 = arith.constant 0 : index
    %18 = vector.load %arg6[%c0_12, %c0_13] : memref<64x32xbf16, #tpu.memory_space<vmem>>, vector<64x32xbf16>
    %cst_14 = arith.constant dense<0.000000e+00> : vector<152x32xf32>
    %19 = tpu.matmul %17, %18, %cst_14 {dimension_numbers = #tpu.dot_dimension_numbers<[1], [0], [0], [1], [0, 0, 1, 1], [], []>} : vector<152x64xbf16>, vector<64x32xbf16>, vector<152x32xf32> -> vector<152x32xf32>
    %c0_15 = arith.constant 0 : index
    %c0_16 = arith.constant 0 : index
    %20 = vector.load %arg7[%c0_15, %c0_16] : memref<1x32xf32, #tpu.memory_space<vmem>>, vector<1x32xf32>
    %21 = vector.broadcast %20 : vector<1x32xf32> to vector<152x32xf32>
    %22 = arith.addf %19, %21 : vector<152x32xf32>
    %cst_17 = arith.constant 0.000000e+00 : f32
    %23 = vector.broadcast %cst_17 : f32 to vector<152x32xf32>
    %24 = arith.maximumf %22, %23 : vector<152x32xf32>
    %25 = arith.truncf %24 : vector<152x32xf32> to vector<152x32xbf16>
    %c0_18 = arith.constant 0 : index
    %c0_19 = arith.constant 0 : index
    %26 = vector.load %arg8[%c0_18, %c0_19] : memref<32x16xbf16, #tpu.memory_space<vmem>>, vector<32x16xbf16>
    %cst_20 = arith.constant dense<0.000000e+00> : vector<152x16xf32>
    %27 = tpu.matmul %25, %26, %cst_20 {dimension_numbers = #tpu.dot_dimension_numbers<[1], [0], [0], [1], [0, 0, 1, 1], [], []>} : vector<152x32xbf16>, vector<32x16xbf16>, vector<152x16xf32> -> vector<152x16xf32>
    %c0_21 = arith.constant 0 : index
    %c0_22 = arith.constant 0 : index
    %28 = vector.load %arg9[%c0_21, %c0_22] : memref<1x16xf32, #tpu.memory_space<vmem>>, vector<1x16xf32>
    %29 = vector.broadcast %28 : vector<1x16xf32> to vector<152x16xf32>
    %30 = arith.addf %27, %29 : vector<152x16xf32>
    %cst_23 = arith.constant 0.000000e+00 : f32
    %31 = vector.broadcast %cst_23 : f32 to vector<152x16xf32>
    %32 = arith.maximumf %30, %31 : vector<152x16xf32>
    %33 = arith.truncf %32 : vector<152x16xf32> to vector<152x16xbf16>
    %c0_24 = arith.constant 0 : index
    %c0_25 = arith.constant 0 : index
    %34 = vector.load %arg10[%c0_24, %c0_25] : memref<16x128xbf16, #tpu.memory_space<vmem>>, vector<16x128xbf16>
    %cst_26 = arith.constant dense<0.000000e+00> : vector<152x128xf32>
    %35 = tpu.matmul %33, %34, %cst_26 {dimension_numbers = #tpu.dot_dimension_numbers<[1], [0], [0], [1], [0, 0, 1, 1], [], []>} : vector<152x16xbf16>, vector<16x128xbf16>, vector<152x128xf32> -> vector<152x128xf32>
    %c0_27 = arith.constant 0 : index
    %c0_28 = arith.constant 0 : index
    %36 = vector.load %arg11[%c0_27, %c0_28] : memref<1x128xf32, #tpu.memory_space<vmem>>, vector<1x128xf32>
    %37 = vector.broadcast %36 : vector<1x128xf32> to vector<152x128xf32>
    %38 = arith.addf %35, %37 : vector<152x128xf32>
    %cst_29 = arith.constant dense<0xFF800000> : vector<152xf32>
    %39 = vector.multi_reduction <maximumf>, %38, %cst_29 [1] : vector<152x128xf32> to vector<152xf32>
    %40 = vector.shape_cast %39 : vector<152xf32> to vector<152x1xf32>
    %41 = vector.broadcast %40 : vector<152x1xf32> to vector<152x128xf32>
    %42 = arith.subf %38, %41 : vector<152x128xf32>
    %43 = math.exp %42 : vector<152x128xf32>
    %cst_30 = arith.constant dense<0.000000e+00> : vector<152xf32>
    %44 = vector.multi_reduction <add>, %43, %cst_30 [1] : vector<152x128xf32> to vector<152xf32>
    %45 = vector.shape_cast %44 : vector<152xf32> to vector<152x1xf32>
    %46 = math.log %45 : vector<152x1xf32>
    %47 = vector.broadcast %46 : vector<152x1xf32> to vector<152x128xf32>
    %48 = arith.subf %42, %47 : vector<152x128xf32>
    %c0_31 = arith.constant 0 : index
    %c0_32 = arith.constant 0 : index
    %49 = vector.load %arg12[%c0_31, %c0_32] : memref<152x128xf32, #tpu.memory_space<vmem>>, vector<152x128xf32>
    tpu.vector_store %arg12[%c0_31, %c0_32], %48 {strides = array<i32>} : memref<152x128xf32, #tpu.memory_space<vmem>>, vector<152x128xf32>,
    return
  }
  func.func @transform_0(%arg0: i32) -> (i32, i32) {
    %c0_i32 = arith.constant 0 : i32
    %c0_i32_0 = arith.constant 0 : i32
    return %arg0, %c0_i32 : i32, i32
  }
  func.func @transform_1(%arg0: i32) -> (i32, i32) {
    %c0_i32 = arith.constant 0 : i32
    %c0_i32_0 = arith.constant 0 : i32
    %c0_i32_1 = arith.constant 0 : i32
    return %c0_i32, %c0_i32_0 : i32, i32
  }
  func.func @transform_2(%arg0: i32) -> (i32, i32) {
    %c0_i32 = arith.constant 0 : i32
    %c0_i32_0 = arith.constant 0 : i32
    %c0_i32_1 = arith.constant 0 : i32
    return %c0_i32, %c0_i32_0 : i32, i32
  }
  func.func @transform_3(%arg0: i32) -> (i32, i32) {
    %c0_i32 = arith.constant 0 : i32
    %c0_i32_0 = arith.constant 0 : i32
    %c0_i32_1 = arith.constant 0 : i32
    return %c0_i32, %c0_i32_0 : i32, i32
  }
  func.func @transform_4(%arg0: i32) -> (i32, i32) {
    %c0_i32 = arith.constant 0 : i32
    %c0_i32_0 = arith.constant 0 : i32
    %c0_i32_1 = arith.constant 0 : i32
    return %c0_i32, %c0_i32_0 : i32, i32
  }
  func.func @transform_5(%arg0: i32) -> (i32, i32) {
    %c0_i32 = arith.constant 0 : i32
    %c0_i32_0 = arith.constant 0 : i32
    %c0_i32_1 = arith.constant 0 : i32
    return %c0_i32, %c0_i32_0 : i32, i32
  }
  func.func @transform_6(%arg0: i32) -> (i32, i32) {
    %c0_i32 = arith.constant 0 : i32
    %c0_i32_0 = arith.constant 0 : i32
    %c0_i32_1 = arith.constant 0 : i32
    return %c0_i32, %c0_i32_0 : i32, i32
  }
  func.func @transform_7(%arg0: i32) -> (i32, i32) {
    %c0_i32 = arith.constant 0 : i32
    %c0_i32_0 = arith.constant 0 : i32
    %c0_i32_1 = arith.constant 0 : i32
    return %c0_i32, %c0_i32_0 : i32, i32
  }
  func.func @transform_8(%arg0: i32) -> (i32, i32) {
    %c0_i32 = arith.constant 0 : i32
    %c0_i32_0 = arith.constant 0 : i32
    %c0_i32_1 = arith.constant 0 : i32
    return %c0_i32, %c0_i32_0 : i32, i32
  }
  func.func @transform_9(%arg0: i32) -> (i32, i32) {
    %c0_i32 = arith.constant 0 : i32
    %c0_i32_0 = arith.constant 0 : i32
    %c0_i32_1 = arith.constant 0 : i32
    return %c0_i32, %c0_i32_0 : i32, i32
  }
  func.func @transform_10(%arg0: i32) -> (i32, i32) {
    %c0_i32 = arith.constant 0 : i32
    %c0_i32_0 = arith.constant 0 : i32
    %c0_i32_1 = arith.constant 0 : i32
    return %c0_i32, %c0_i32_0 : i32, i32
  }
  func.func @transform_11(%arg0: i32) -> (i32, i32) {
    %c0_i32 = arith.constant 0 : i32
    %c0_i32_0 = arith.constant 0 : i32
    return %arg0, %c0_i32 : i32, i32
  }
}

</mosaic_0001>

<bundles_post_ra>
// kernel: my_simple_model_forward.1
= control target key start
LH: loop header
LB: loop body
LE: loop exit
PB: predicated region body
PF: predicated region fallthrough
CT: control target
= control target key end

     0   :  { %s2270_s17 = smov 0   ;;  %s2710_s0 = inlined_call_operand.vmem [shape: f32[304,256], index: 0, kind: input, shape index: {}]   ;;  %s2711_s1 = inlined_call_operand.vmem [shape: bf16[256,128], index: 1, kind: input, shape index: {}]   ;;  %s2712_s2 = inlined_call_operand.vmem [shape: f32[1,128], index: 2, kind: input, shape index: {}]   ;;  %s2713_s3 = inlined_call_operand.vmem [shape: bf16[128,64], index: 3, kind: input, shape index: {}]   ;;  %s2714_s4 = inlined_call_operand.vmem [shape: f32[1,64], index: 4, kind: input, shape index: {}]   ;;  %s2715_s5 = inlined_call_operand.vmem [shape: bf16[64,32], index: 5, kind: input, shape index: {}]   ;;  %s2716_s6 = inlined_call_operand.vmem [shape: f32[1,32], index: 6, kind: input, shape index: {}]   ;;  %s2717_s7 = inlined_call_operand.vmem [shape: bf16[32,16], index: 7, kind: input, shape index: {}]   ;;  %s2718_s8 = inlined_call_operand.vmem [shape: f32[1,16], index: 8, kind: input, shape index: {}]   ;;  %s2719_s9 = inlined_call_operand.vmem [shape: bf16[16,128], index: 9, kind: input, shape index: {}]   ;;  %s2720_s10 = inlined_call_operand.vmem [shape: f32[1,128], index: 10, kind: input, shape index: {}]   ;;  %s2721_s11 = inlined_call_operand.vmem [shape: f32[304,128], index: 11, kind: output, shape index: {}]  }
   0x1 LB: > { %s1769_s18 = sadd.s32 4294967295, %s2208_s17   ;;  %p1773_p0 = scmp.ge.s32.totalorder %s2208_s17, 1  ;;  %s2208_s17 = sphi %s2270_s17, %s21_s17  }
   0x2   : > { %p339_p1 = scmp.lt.s32.totalorder %s2208_s17, 3 }
   0x4   : > { %p340_p2 = pnand %p1773_p0, %p339_p1 }
   0x5   : > { %v2095_v0 = vld [vmem:[%s2711_s1 + $0x40] sm:$0xff] (!%p340_p2)   ;;  %s380_s21 = smul.u32 (!%p340_p2), 19, %s1769_s18  ;;  %v2097_v2 = vld [vmem:[%s2711_s1 + $0x48] sm:$0xff] (!%p340_p2)   ;;  %v2099_v4 = vld [vmem:[%s2711_s1 + $0x50] sm:$0xff] (!%p340_p2)   ;;  %vm979_vm0 = vcmask (!%p340_p2), 523264   ;;  %vm1174_vm1 = vcmask (!%p340_p2), 261120  }
   0x6   : > { %343 = sbr.rel (%p340_p2) target bundleno = 1531 (0x5fb), region = 64  ;;  %v2096_v1 = vld [vmem:[%s2711_s1] sm:$0xff] (!%p340_p2)   ;;  %1846 = vmatprep.subr.bf16.mxu0 (!%p340_p2), %v2095_v0  ;;  %v2098_v3 = vld [vmem:[%s2711_s1 + $0x8] sm:$0xff] (!%p340_p2)   ;;  %v2100_v5 = vld [vmem:[%s2711_s1 + $0x10] sm:$0xff] (!%p340_p2)   ;;  %vm1361_vm2 = vcmask (!%p340_p2), 130048  }
   0x7   : > { %p381_p3 = scmp.lt.s32.totalorder (!%p340_p2), %s380_s21, 37  ;;  %1847 = vmatpush3.bf16.msra.mxu0 (!%p340_p2), %v2096_v1  ;;  %v2101_v6 = vld [vmem:[%s2711_s1 + $0x58] sm:$0xff] (!%p340_p2)   ;;  %v2103_v8 = vld [vmem:[%s2711_s1 + $0x60] sm:$0xff] (!%p340_p2)   ;;  %v2105_v10 = vld [vmem:[%s2711_s1 + $0x68] sm:$0xff] (!%p340_p2)  }
   0x8   : > { %1848 = vmatprep.subr.bf16.mxu0 (!%p340_p2), %v2097_v2  ;;  %v2102_v7 = vld [vmem:[%s2711_s1 + $0x18] sm:$0xff] (!%p340_p2)   ;;  %v2104_v9 = vld [vmem:[%s2711_s1 + $0x20] sm:$0xff] (!%p340_p2)   ;;  %v2106_v14 = vld [vmem:[%s2711_s1 + $0x28] sm:$0xff] (!%p340_p2)  }
   0x9   : > { %v2107_v15 = vld [vmem:[%s2711_s1 + $0x70] sm:$0xff] (!%p340_p2)   ;;  %v2109_v17 = vld [vmem:[%s2711_s1 + $0x78] sm:$0xff] (!%p340_p2)   ;;  %v2111_v23 = vld [vmem:[%s2713_s3] sm:$0xff] (!%p340_p2)  }
   0xa   : > { %v2108_v16 = vld [vmem:[%s2711_s1 + $0x30] sm:$0xff] (!%p340_p2)   ;;  %v2110_v18 = vld [vmem:[%s2711_s1 + $0x38] sm:$0xff] (!%p340_p2)   ;;  %v2112_v25 = vld [vmem:[%s2713_s3 + $0x8] sm:$0xff] (!%p340_p2)   ;;  %1977 = vmatprep.subr.bf16.mxu1 (!%p340_p2), %v2111_v23 }
   0xb   : > { %1849 = vmatpush3.bf16.msra.mxu0 (!%p340_p2), %v2098_v3  ;;  %v2113_v27 = vld [vmem:[%s2713_s3 + $0x10] sm:$0xff] (!%p340_p2)   ;;  %1978 = vmatpush3.bf16.msra.mxu1 (!%p340_p2), %v2111_v23 }
   0xc   : > { %1850 = vmatprep.subr.bf16.mxu0 (!%p340_p2), %v2099_v4  ;;  %1979 = vmatprep.subr.bf16.mxu1 (!%p340_p2), %v2112_v25 }
   0xd   : > { %s2723_s21 = smov (!%p381_p3, %s380_s21), 37 }
   0xe   : > { %s1845_s15 = sshll.u32 %s2723_s21, 4  ;;  %s1776_s29 = sshll.u32 %s2723_s21, 3 }
   0xf   : > { %1851 = vmatpush3.bf16.msra.mxu0 %v2100_v5  ;;  %s2311_s24 = scalar_lea.vmem %s2710_s0, %s1845_s15  ;;  %1980 = vmatpush3.bf16.msra.mxu1 %v2112_v25  ;;  %s2667_s13 = scalar_lea.vmem %s2721_s11, %s1776_s29 }
  0x10   : > { %1852 = vmatprep.subr.bf16.mxu0 %v2101_v6  ;;  %v395_v11 = vld [vmem:[%s2311_s24 + $0x8] sm:$0xff]  ;;  %v397_v12 = vld [vmem:[%s2311_s24 + $0x18] sm:$0xff]  ;;  %v394_v19 = vld [vmem:[%s2311_s24] sm:$0xff]  ;;  %1981 = vmatprep.subr.bf16.mxu1 %v2113_v27 }
  0x11   : > { %v433_v13 = vpack.c.bf16 %v397_v12, %v395_v11  ;;  %v396_v20 = vld [vmem:[%s2311_s24 + $0x10] sm:$0xff]  ;;  %v399_v21 = vld [vmem:[%s2311_s24 + $0x28] sm:$0xff]  ;;  %v401_v22 = vld [vmem:[%s2311_s24 + $0x38] sm:$0xff] }
  0x12   : > { %v432_v24 = vpack.c.bf16 %v396_v20, %v394_v19  ;;  %v435_v26 = vpack.c.bf16 %v401_v22, %v399_v21  ;;  %v398_v28 = vld [vmem:[%s2311_s24 + $0x20] sm:$0xff]  ;;  %v400_v29 = vld [vmem:[%s2311_s24 + $0x30] sm:$0xff]  ;;  %v403_v30 = vld [vmem:[%s2311_s24 + $0x48] sm:$0xff] }
  0x13   : > { %1853 = vmatpush3.bf16.msra.mxu0 %v2102_v7  ;;  %619 = vmatprep.mubr.bf16.mxu0 %v433_v13  ;;  %v405_v31 = vld [vmem:[%s2311_s24 + $0x58] sm:$0xff]  ;;  %v434_v32 = vpack.c.bf16 %v400_v29, %v398_v28  ;;  %v402_v34 = vld [vmem:[%s2311_s24 + $0x40] sm:$0xff]  ;;  %v404_v35 = vld [vmem:[%s2311_s24 + $0x50] sm:$0xff] }
  0x14   : > { %1854 = vmatprep.subr.bf16.mxu0 %v2103_v8  ;;  %v437_v33 = vpack.c.bf16 %v405_v31, %v403_v30  ;;  %1982 = vmatpush3.bf16.msra.mxu1 %v2113_v27  ;;  %v407_v36 = vld [vmem:[%s2311_s24 + $0x68] sm:$0xff]  ;;  %v409_v37 = vld [vmem:[%s2311_s24 + $0x78] sm:$0xff]  ;;  %v436_v38 = vpack.c.bf16 %v404_v35, %v402_v34  ;;  %v406_v40 = vld [vmem:[%s2311_s24 + $0x60] sm:$0xff] }
  0x15   : > { %v439_v39 = vpack.c.bf16 %v409_v37, %v407_v36  ;;  %v408_v41 = vld [vmem:[%s2311_s24 + $0x70] sm:$0xff]  ;;  %v411_v42 = vld [vmem:[%s2311_s24 + $0x88] sm:$0xff]  ;;  %v413_v43 = vld [vmem:[%s2311_s24 + $0x98] sm:$0xff] }
  0x16   : > { %v438_v44 = vpack.c.bf16 %v408_v41, %v406_v40  ;;  %v441_v45 = vpack.c.bf16 %v413_v43, %v411_v42  ;;  %v410_v46 = vld [vmem:[%s2311_s24 + $0x80] sm:$0xff]  ;;  %v412_v47 = vld [vmem:[%s2311_s24 + $0x90] sm:$0xff]  ;;  %v415_v48 = vld [vmem:[%s2311_s24 + $0xa8] sm:$0xff] }
  0x17   : > { %1855 = vmatpush3.bf16.msra.mxu0 %v2104_v9  ;;  %v417_v49 = vld [vmem:[%s2311_s24 + $0xb8] sm:$0xff]  ;;  %v440_v50 = vpack.c.bf16 %v412_v47, %v410_v46  ;;  %v414_v52 = vld [vmem:[%s2311_s24 + $0xa0] sm:$0xff]  ;;  %v416_v53 = vld [vmem:[%s2311_s24 + $0xb0] sm:$0xff] }
  0x18   : > { %1856 = vmatprep.subr.bf16.mxu0 %v2105_v10  ;;  %v443_v51 = vpack.c.bf16 %v417_v49, %v415_v48  ;;  %v419_v54 = vld [vmem:[%s2311_s24 + $0xc8] sm:$0xff]  ;;  %v421_v55 = vld [vmem:[%s2311_s24 + $0xd8] sm:$0xff]  ;;  %v442_v56 = vpack.c.bf16 %v416_v53, %v414_v52  ;;  %v418_v58 = vld [vmem:[%s2311_s24 + $0xc0] sm:$0xff] }
  0x19   : > { %v445_v57 = vpack.c.bf16 %v421_v55, %v419_v54  ;;  %v420_v59 = vld [vmem:[%s2311_s24 + $0xd0] sm:$0xff]  ;;  %v423_v60 = vld [vmem:[%s2311_s24 + $0xe8] sm:$0xff]  ;;  %v425_v61 = vld [vmem:[%s2311_s24 + $0xf8] sm:$0xff] }
  0x1a   : > { %v444_v62 = vpack.c.bf16 %v420_v59, %v418_v58  ;;  %v447_v63 = vpack.c.bf16 %v425_v61, %v423_v60  ;;  %v422_v0 = vld [vmem:[%s2311_s24 + $0xe0] sm:$0xff]  ;;  %v424_v1 = vld [vmem:[%s2311_s24 + $0xf0] sm:$0xff]  ;;  %v427_v2 = vld [vmem:[%s2311_s24 + $0x108] sm:$0xff] }
  0x1b   : > { %1857 = vmatpush3.bf16.msra.mxu0 %v2106_v14  ;;  %v429_v3 = vld [vmem:[%s2311_s24 + $0x118] sm:$0xff]  ;;  %v446_v4 = vpack.c.bf16 %v424_v1, %v422_v0  ;;  %v426_v6 = vld [vmem:[%s2311_s24 + $0x100] sm:$0xff]  ;;  %v428_v7 = vld [vmem:[%s2311_s24 + $0x110] sm:$0xff] }
  0x1c   : > { %1858 = vmatprep.subr.bf16.mxu0 %v2107_v15  ;;  %v449_v5 = vpack.c.bf16 %v429_v3, %v427_v2  ;;  %v431_v8 = vld [vmem:[%s2311_s24 + $0x128] sm:$0xff]  ;;  %v448_v9 = vpack.c.bf16 %v428_v7, %v426_v6  ;;  %v430_v11 = vld [vmem:[%s2311_s24 + $0x120] sm:$0xff]  ;;  %v2114_v13 = vld [vmem:[%s2713_s3 + $0x18] sm:$0xff]  }
  0x1d   : > { %v451_v10 = vpack.c.bf16 %v431_v8, %v431_v8  ;;  %v450_v12 = vpack.c.bf16 %v430_v11, %v430_v11  ;;  %1983 = vmatprep.subr.bf16.mxu1 %v2114_v13  ;;  %v2115_v14 = vld [vmem:[%s2713_s3 + $0x20] sm:$0xff]   ;;  %v2116_v15 = vld [vmem:[%s2713_s3 + $0x28] sm:$0xff]  }
  0x1e   : > { %1984 = vmatpush3.bf16.msra.mxu1 %v2114_v13  ;;  %v2402_v21 = vld [vmem:[%s2712_s2] ss:$0 sm:$0xff]  ;;  %v2120_v46 = vld [vmem:[%s2715_s5 + $0x8] sm:$0xff]  }
  0x1f   : > { %1859 = vmatpush3.bf16.msra.mxu0 %v2108_v16  ;;  %1985 = vmatprep.subr.bf16.mxu1 %v2115_v14  ;;  %v2117_v16 = vld [vmem:[%s2713_s3 + $0x30] sm:$0xff]  }
  0x20   : > { %1860 = vmatprep.subr.bf16.mxu0 %v2109_v17  ;;  %v2118_v17 = vld [vmem:[%s2713_s3 + $0x38] sm:$0xff]  }
  0x22   : > { %1986 = vmatpush3.bf16.msra.mxu1 %v2115_v14 }
  0x23   : > { %1861 = vmatpush3.bf16.msra.mxu0 %v2110_v18  ;;  %1987 = vmatprep.subr.bf16.mxu1 %v2116_v15  ;;  %v2119_v18 = vld [vmem:[%s2715_s5] sm:$0xff]  }
  0x26   : > { %620 = vmatmul.mubr.bf16.vlgmr.msra.gmra.mrb[0].mxu0 %v432_v24  ;;  %1988 = vmatpush3.bf16.msra.mxu1 %v2116_v15 }
  0x27   : > { %627 = vmatprep.mubr.bf16.mxu0 %v435_v26  ;;  %1989 = vmatprep.subr.bf16.mxu1 %v2117_v16 }
  0x2a   : > { %1990 = vmatpush3.bf16.msra.mxu1 %v2117_v16 }
  0x2b   : > { %1991 = vmatprep.subr.bf16.mxu1 %v2118_v17 }
  0x2e   : > { %628 = vmatmul.mubr.bf16.gmra.mrb[4].mxu0 %v434_v32  ;;  %1992 = vmatpush3.bf16.msra.mxu1 %v2118_v17 }
  0x2f   : > { %635 = vmatprep.mubr.bf16.mxu0 %v437_v33  ;;  %2013 = vmatprep.subr.bf16.mxu1 %v2119_v18 }
  0x36   : > { %636 = vmatmul.mubr.bf16.gmra.mrb[8].mxu0 %v436_v38 }
  0x37   : > { %643 = vmatprep.mubr.bf16.mxu0 %v439_v39 }
  0x3e   : > { %644 = vmatmul.mubr.bf16.gmra.mrb[12].mxu0 %v438_v44 }
  0x3f   : > { %651 = vmatprep.mubr.bf16.mxu0 %v441_v45 }
  0x46   : > { %652 = vmatmul.mubr.bf16.gmra.mrb[16].mxu0 %v440_v50 }
  0x47   : > { %659 = vmatprep.mubr.bf16.mxu0 %v443_v51 }
  0x4e   : > { %660 = vmatmul.mubr.bf16.gmra.mrb[20].mxu0 %v442_v56 }
  0x4f   : > { %667 = vmatprep.mubr.bf16.mxu0 %v445_v57 }
  0x56   : > { %668 = vmatmul.mubr.bf16.gmra.mrb[24].mxu0 %v444_v62 }
  0x57   : > { %675 = vmatprep.mubr.bf16.mxu0 %v447_v63 }
  0x5e   : > { %676 = vmatmul.mubr.bf16.gmra.mrb[28].mxu0 %v446_v4 }
  0x5f   : > { %683 = vmatprep.mubr.bf16.mxu0 %v449_v5 }
  0x66   : > { %684 = vmatmul.mubr.bf16.gmra.mrb[32].mxu0 %v448_v9 }
  0x67   : > { %691 = vmatprep.mubr.bf16.mxu0 %v451_v10 }
  0x6e   : > { %692 = vmatmul.mubr.bf16.gmra.mrb[36].mxu0 %v450_v12 }
  0xf9   : > { %v1862_v19 = vpop.f32.mrb[0].mxu0 }
  0xfa   : > { %v1863_v20 = vpop.f32.mrb[1].mxu0 }
  0xfb   : > { %v1864_v22 = vadd.f32 %v1863_v20, %v1862_v19  ;;  %v1865_v23 = vpop.f32.mrb[2].mxu0 }
  0xfc   : > { %v1866_v24 = vpop.f32.mrb[3].mxu0 }
  0xfd   : > { %v1867_v25 = vadd.f32 %v1866_v24, %v1865_v23  ;;  %v622_v26 = vadd.f32 %v1864_v22, %v2402_v21 }
  0xff   : > { %v625_v27 = vadd.f32 %v1867_v25, %v2402_v21  ;;  %v699_v29 = vmax.f32 %v622_v26, 0.0 }
 0x101   : > { %v1868_v28 = vpop.f32.mrb[4].mxu0  ;;  %v700_v30 = vmax.f32 %v625_v27, 0.0 }
 0x102   : > { %v1869_v31 = vpop.f32.mrb[5].mxu0 }
 0x103   : > { %v1870_v32 = vadd.f32 %v1869_v31, %v1868_v28  ;;  %v1871_v33 = vpop.f32.mrb[6].mxu0  ;;  %v718_v34 = vpack.c.bf16 %v700_v30, %v699_v29 }
 0x104   : > { %v1872_v35 = vpop.f32.mrb[7].mxu0 }
 0x105   : > { %v630_v36 = vadd.f32 %v1870_v32, %v2402_v21  ;;  %v1873_v37 = vadd.f32 %v1872_v35, %v1871_v33  ;;  %1993 = vmatprep.mubr.bf16.mxu1 %v718_v34 }
 0x107   : > { %v633_v38 = vadd.f32 %v1873_v37, %v2402_v21  ;;  %v701_v39 = vmax.f32 %v630_v36, 0.0 }
 0x109   : > { %v702_v40 = vmax.f32 %v633_v38, 0.0  ;;  %v1874_v41 = vpop.f32.mrb[8].mxu0 }
 0x10a   : > { %v1875_v42 = vpop.f32.mrb[9].mxu0 }
 0x10b   : > { %v1876_v43 = vadd.f32 %v1875_v42, %v1874_v41  ;;  %v1877_v44 = vpop.f32.mrb[10].mxu0  ;;  %v719_v45 = vpack.c.bf16 %v702_v40, %v701_v39 }
 0x10c   : > { %v1878_v47 = vpop.f32.mrb[11].mxu0 }
 0x10d   : > { %v638_v48 = vadd.f32 %v1876_v43, %v2402_v21  ;;  %v1879_v49 = vadd.f32 %v1878_v47, %v1877_v44  ;;  %1994 = vmatmul.mubr.bf16.vlgmr.msra.gmra.mrb[0].mxu1 %v719_v45 }
 0x10e   : > { %2014 = vmatpush3.bf16.msra.mxu1 %v2119_v18 }
 0x10f   : > { %v641_v50 = vadd.f32 %v1879_v49, %v2402_v21  ;;  %2015 = vmatprep.subr.bf16.mxu1 %v2120_v46  ;;  %v703_v51 = vmax.f32 %v638_v48, 0.0 }
 0x111   : > { %v704_v52 = vmax.f32 %v641_v50, 0.0  ;;  %v1880_v53 = vpop.f32.mrb[12].mxu0 }
 0x112   : > { %v1881_v54 = vpop.f32.mrb[13].mxu0  ;;  %2016 = vmatpush3.bf16.msra.mxu1 %v2120_v46 }
 0x113   : > { %v1882_v55 = vadd.f32 %v1881_v54, %v1880_v53  ;;  %v1883_v56 = vpop.f32.mrb[14].mxu0  ;;  %v720_v57 = vpack.c.bf16 %v704_v52, %v703_v51 }
 0x114   : > { %v1884_v58 = vpop.f32.mrb[15].mxu0 }
 0x115   : > { %v646_v59 = vadd.f32 %v1882_v55, %v2402_v21  ;;  %v1885_v60 = vadd.f32 %v1884_v58, %v1883_v56  ;;  %1997 = vmatprep.mubr.bf16.mxu1 %v720_v57 }
 0x117   : > { %v649_v61 = vadd.f32 %v1885_v60, %v2402_v21  ;;  %v705_v62 = vmax.f32 %v646_v59, 0.0 }
 0x119   : > { %v706_v63 = vmax.f32 %v649_v61, 0.0  ;;  %v1886_v0 = vpop.f32.mrb[16].mxu0 }
 0x11a   : > { %v1887_v1 = vpop.f32.mrb[17].mxu0 }
 0x11b   : > { %v1888_v2 = vadd.f32 %v1887_v1, %v1886_v0  ;;  %v1889_v3 = vpop.f32.mrb[18].mxu0  ;;  %v721_v4 = vpack.c.bf16 %v706_v63, %v705_v62  ;;  %v2121_v1 = vld [vmem:[%s2715_s5 + $0x10] sm:$0xff]  }
 0x11c   : > { %v1890_v5 = vpop.f32.mrb[19].mxu0  ;;  %2017 = vmatprep.subr.bf16.mxu1 %v2121_v1 }
 0x11d   : > { %v654_v6 = vadd.f32 %v1888_v2, %v2402_v21  ;;  %v1891_v7 = vadd.f32 %v1890_v5, %v1889_v3  ;;  %1998 = vmatmul.mubr.bf16.gmra.mrb[4].mxu1 %v721_v4  ;;  %v2122_v2 = vld [vmem:[%s2715_s5 + $0x18] sm:$0xff]   ;;  %v2438_v3 = vld [vmem:[%s2714_s4] ss:$0 sm:$0xff] }
 0x11e   : > { %2018 = vmatpush3.bf16.msra.mxu1 %v2121_v1 }
 0x11f   : > { %v657_v8 = vadd.f32 %v1891_v7, %v2402_v21  ;;  %v707_v9 = vmax.f32 %v654_v6, 0.0  ;;  %2019 = vmatprep.subr.bf16.mxu1 %v2122_v2 }
 0x121   : > { %v708_v10 = vmax.f32 %v657_v8, 0.0  ;;  %v1892_v11 = vpop.f32.mrb[20].mxu0 }
 0x122   : > { %v1893_v12 = vpop.f32.mrb[21].mxu0  ;;  %2020 = vmatpush3.bf16.msra.mxu1 %v2122_v2 }
 0x123   : > { %v1894_v13 = vadd.f32 %v1893_v12, %v1892_v11  ;;  %v1895_v14 = vpop.f32.mrb[22].mxu0  ;;  %v722_v15 = vpack.c.bf16 %v708_v10, %v707_v9 }
 0x124   : > { %v1896_v16 = vpop.f32.mrb[23].mxu0 }
 0x125   : > { %v662_v17 = vadd.f32 %v1894_v13, %v2402_v21  ;;  %v1897_v18 = vadd.f32 %v1896_v16, %v1895_v14  ;;  %2001 = vmatprep.mubr.bf16.mxu1 %v722_v15 }
 0x127   : > { %v665_v19 = vadd.f32 %v1897_v18, %v2402_v21  ;;  %v709_v20 = vmax.f32 %v662_v17, 0.0 }
 0x129   : > { %v710_v22 = vmax.f32 %v665_v19, 0.0  ;;  %v1898_v23 = vpop.f32.mrb[24].mxu0 }
 0x12a   : > { %v1899_v24 = vpop.f32.mrb[25].mxu0 }
 0x12b   : > { %v1900_v25 = vadd.f32 %v1899_v24, %v1898_v23  ;;  %v1901_v26 = vpop.f32.mrb[26].mxu0  ;;  %v723_v27 = vpack.c.bf16 %v710_v22, %v709_v20 }
 0x12c   : > { %v1902_v28 = vpop.f32.mrb[27].mxu0 }
 0x12d   : > { %v670_v29 = vadd.f32 %v1900_v25, %v2402_v21  ;;  %v1903_v30 = vadd.f32 %v1902_v28, %v1901_v26  ;;  %2002 = vmatmul.mubr.bf16.gmra.mrb[8].mxu1 %v723_v27 }
 0x12f   : > { %v673_v31 = vadd.f32 %v1903_v30, %v2402_v21  ;;  %v711_v32 = vmax.f32 %v670_v29, 0.0 }
 0x131   : > { %v712_v33 = vmax.f32 %v673_v31, 0.0  ;;  %v1904_v34 = vpop.f32.mrb[28].mxu0 }
 0x132   : > { %v1905_v35 = vpop.f32.mrb[29].mxu0 }
 0x133   : > { %v1906_v36 = vadd.f32 %v1905_v35, %v1904_v34  ;;  %v1907_v37 = vpop.f32.mrb[30].mxu0  ;;  %v724_v38 = vpack.c.bf16 %v712_v33, %v711_v32 }
 0x134   : > { %v1908_v39 = vpop.f32.mrb[31].mxu0 }
 0x135   : > { %v678_v40 = vadd.f32 %v1906_v36, %v2402_v21  ;;  %v1909_v41 = vadd.f32 %v1908_v39, %v1907_v37  ;;  %2005 = vmatprep.mubr.bf16.mxu1 %v724_v38 }
 0x137   : > { %v681_v42 = vadd.f32 %v1909_v41, %v2402_v21  ;;  %v713_v43 = vmax.f32 %v678_v40, 0.0 }
 0x139   : > { %v714_v44 = vmax.f32 %v681_v42, 0.0  ;;  %v1910_v45 = vpop.f32.mrb[32].mxu0 }
 0x13a   : > { %v1911_v46 = vpop.f32.mrb[33].mxu0 }
 0x13b   : > { %v1912_v47 = vadd.f32 %v1911_v46, %v1910_v45  ;;  %v1913_v48 = vpop.f32.mrb[34].mxu0  ;;  %v725_v49 = vpack.c.bf16 %v714_v44, %v713_v43 }
 0x13c   : > { %v1914_v50 = vpop.f32.mrb[35].mxu0 }
 0x13d   : > { %v686_v51 = vadd.f32 %v1912_v47, %v2402_v21  ;;  %v1915_v52 = vadd.f32 %v1914_v50, %v1913_v48  ;;  %2006 = vmatmul.mubr.bf16.gmra.mrb[12].mxu1 %v725_v49 }
 0x13f   : > { %v689_v53 = vadd.f32 %v1915_v52, %v2402_v21  ;;  %v715_v54 = vmax.f32 %v686_v51, 0.0 }
 0x141   : > { %v716_v55 = vmax.f32 %v689_v53, 0.0  ;;  %v1916_v56 = vpop.f32.mrb[36].mxu0 }
 0x142   : > { %v1917_v57 = vpop.f32.mrb[37].mxu0 }
 0x143   : > { %v1918_v58 = vadd.f32 %v1917_v57, %v1916_v56  ;;  %v1919_v59 = vpop.f32.mrb[38].mxu0  ;;  %v726_v60 = vpack.c.bf16 %v716_v55, %v715_v54 }
 0x144   : > { %v1920_v61 = vpop.f32.mrb[39].mxu0 }
 0x145   : > { %v694_v62 = vadd.f32 %v1918_v58, %v2402_v21  ;;  %2009 = vmatprep.mubr.bf16.mxu1 %v726_v60  ;;  %v2123_v21 = vld [vmem:[%s2717_s7] sm:$0xff]  }
 0x146   : > { %2041 = vmatprep.subr.bf16.mxu0 %v2123_v21 }
 0x147   : > { %v717_v63 = vmax.f32 %v694_v62, 0.0  ;;  %2042 = vmatpush3.bf16.msra.mxu0 %v2123_v21 }
 0x149   : > { %v727_v0 = vpack.c.bf16 %v717_v63, %v717_v63 }
 0x14b   : > { %2010 = vmatmul.mubr.bf16.gmra.mrb[16].mxu1 %v727_v0 }
 0x1e0   : > { %v1995_v4 = vpop.f32.mrb[0].mxu1 }
 0x1e1   : > { %v842_v5 = vadd.f32 %v1995_v4, %v2438_v3  ;;  %v833_v6 = vpop.f32.mrb[1].mxu1 }
 0x1e2   : > { %v834_v7 = vadd.f32 %v2438_v3, %v833_v6  ;;  %v1996_v8 = vpop.f32.mrb[2].mxu1 }
 0x1e3   : > { %v845_v9 = vadd.f32 %v1996_v8, %v2438_v3  ;;  %v836_v10 = vpop.f32.mrb[3].mxu1  ;;  %v913_v12 = vmax.f32 %v842_v5, 0.0 }
 0x1e4   : > { %v837_v11 = vadd.f32 %v2438_v3, %v836_v10  ;;  %v911_v14 = vmax.f32 %v834_v7, 0.0  ;;  %v2475_v10 = vld [vmem:[%s2716_s6] ss:$0 sm:$0xff] }
 0x1e5   : > { %v914_v13 = vmax.f32 %v845_v9, 0.0  ;;  %v2124_v9 = vld [vmem:[%s2717_s7 + $0x8] sm:$0xff]  }
 0x1e6   : > { %v912_v15 = vmax.f32 %v837_v11, 0.0  ;;  %2043 = vmatprep.subr.bf16.mxu0 %v2124_v9 }
 0x1e7   : > { %v931_v16 = vpack.c.bf16 %v914_v13, %v913_v12  ;;  %2044 = vmatpush3.bf16.msra.mxu0 %v2124_v9 }
 0x1e8   : > { %v930_v17 = vpack.c.bf16 %v912_v15, %v911_v14 }
 0x1ea   : > { %2021 = vmatprep.mubr.msk.bf16.mxu1 %vm979_vm0, %v930_v17 }
 0x1eb   : > { %2022 = vmatmul.mubr.msk.bf16.vlgmr.msra.gmra.mrb[20].mxu1 %vm979_vm0, %v931_v16 }
 0x1f0   : > { %v1999_v18 = vpop.f32.mrb[4].mxu1 }
 0x1f1   : > { %v858_v19 = vadd.f32 %v1999_v18, %v2438_v3  ;;  %v849_v20 = vpop.f32.mrb[5].mxu1 }
 0x1f2   : > { %v850_v22 = vadd.f32 %v2438_v3, %v849_v20  ;;  %v2000_v23 = vpop.f32.mrb[6].mxu1 }
 0x1f3   : > { %v861_v24 = vadd.f32 %v2000_v23, %v2438_v3  ;;  %v852_v25 = vpop.f32.mrb[7].mxu1  ;;  %v917_v27 = vmax.f32 %v858_v19, 0.0 }
 0x1f4   : > { %v853_v26 = vadd.f32 %v2438_v3, %v852_v25  ;;  %v915_v29 = vmax.f32 %v850_v22, 0.0 }
 0x1f5   : > { %v918_v28 = vmax.f32 %v861_v24, 0.0 }
 0x1f6   : > { %v916_v30 = vmax.f32 %v853_v26, 0.0 }
 0x1f7   : > { %v933_v31 = vpack.c.bf16 %v918_v28, %v917_v27 }
 0x1f8   : > { %v932_v32 = vpack.c.bf16 %v916_v30, %v915_v29 }
 0x1fa   : > { %2025 = vmatprep.mubr.msk.bf16.mxu1 %vm979_vm0, %v932_v32 }
 0x1fb   : > { %2026 = vmatmul.mubr.msk.bf16.gmra.mrb[24].mxu1 %vm979_vm0, %v933_v31 }
 0x200   : > { %v2003_v33 = vpop.f32.mrb[8].mxu1 }
 0x201   : > { %v874_v34 = vadd.f32 %v2003_v33, %v2438_v3  ;;  %v865_v35 = vpop.f32.mrb[9].mxu1 }
 0x202   : > { %v866_v36 = vadd.f32 %v2438_v3, %v865_v35  ;;  %v2004_v37 = vpop.f32.mrb[10].mxu1 }
 0x203   : > { %v877_v38 = vadd.f32 %v2004_v37, %v2438_v3  ;;  %v868_v39 = vpop.f32.mrb[11].mxu1  ;;  %v921_v41 = vmax.f32 %v874_v34, 0.0 }
 0x204   : > { %v869_v40 = vadd.f32 %v2438_v3, %v868_v39  ;;  %v919_v43 = vmax.f32 %v866_v36, 0.0 }
 0x205   : > { %v922_v42 = vmax.f32 %v877_v38, 0.0 }
 0x206   : > { %v920_v44 = vmax.f32 %v869_v40, 0.0 }
 0x207   : > { %v935_v45 = vpack.c.bf16 %v922_v42, %v921_v41 }
 0x208   : > { %v934_v46 = vpack.c.bf16 %v920_v44, %v919_v43 }
 0x20a   : > { %2029 = vmatprep.mubr.msk.bf16.mxu1 %vm979_vm0, %v934_v46 }
 0x20b   : > { %2030 = vmatmul.mubr.msk.bf16.gmra.mrb[28].mxu1 %vm979_vm0, %v935_v45 }
 0x210   : > { %v2007_v47 = vpop.f32.mrb[12].mxu1 }
 0x211   : > { %v890_v48 = vadd.f32 %v2007_v47, %v2438_v3  ;;  %v881_v49 = vpop.f32.mrb[13].mxu1 }
 0x212   : > { %v882_v50 = vadd.f32 %v2438_v3, %v881_v49  ;;  %v2008_v51 = vpop.f32.mrb[14].mxu1 }
 0x213   : > { %v893_v52 = vadd.f32 %v2008_v51, %v2438_v3  ;;  %v884_v53 = vpop.f32.mrb[15].mxu1  ;;  %v925_v55 = vmax.f32 %v890_v48, 0.0 }
 0x214   : > { %v885_v54 = vadd.f32 %v2438_v3, %v884_v53  ;;  %v923_v57 = vmax.f32 %v882_v50, 0.0 }
 0x215   : > { %v926_v56 = vmax.f32 %v893_v52, 0.0 }
 0x216   : > { %v924_v58 = vmax.f32 %v885_v54, 0.0 }
 0x217   : > { %v937_v59 = vpack.c.bf16 %v926_v56, %v925_v55 }
 0x218   : > { %v936_v60 = vpack.c.bf16 %v924_v58, %v923_v57 }
 0x21a   : > { %2033 = vmatprep.mubr.msk.bf16.mxu1 %vm979_vm0, %v936_v60 }
 0x21b   : > { %2034 = vmatmul.mubr.msk.bf16.gmra.mrb[32].mxu1 %vm979_vm0, %v937_v59 }
 0x21e   : > { %v2011_v61 = vpop.f32.mrb[16].mxu1 }
 0x21f   : > { %v906_v62 = vadd.f32 %v2011_v61, %v2438_v3  ;;  %v897_v63 = vpop.f32.mrb[17].mxu1 }
 0x220   : > { %v898_v0 = vadd.f32 %v2438_v3, %v897_v63  ;;  %v2012_v1 = vpop.f32.mrb[18].mxu1 }
 0x221   : > { %v900_v2 = vpop.f32.mrb[19].mxu1  ;;  %v929_v4 = vmax.f32 %v906_v62, 0.0 }
 0x222   : > { %v901_v21 = vadd.f32 %v2438_v3, %v900_v2  ;;  %v927_v5 = vmax.f32 %v898_v0, 0.0 }
 0x223   : > { %v939_v8 = vpack.c.bf16 %v929_v4, %v929_v4 }
 0x224   : > { %v928_v6 = vmax.f32 %v901_v21, 0.0 }
 0x226   : > { %v938_v7 = vpack.c.bf16 %v928_v6, %v927_v5 }
 0x228   : > { %2037 = vmatprep.mubr.msk.bf16.mxu1 %vm979_vm0, %v938_v7 }
 0x229   : > { %2038 = vmatmul.mubr.msk.bf16.gmra.mrb[36].mxu1 %vm979_vm0, %v939_v8 }
 0x2be   : > { %v2023_v3 = vpop.f32.mrb[20].mxu1 }
 0x2bf   : > { %v1053_v11 = vadd.f32 %v2023_v3, %v2475_v10  ;;  %v1044_v12 = vpop.f32.mrb[21].mxu1 }
 0x2c0   : > { %v1045_v13 = vadd.f32 %v2475_v10, %v1044_v12  ;;  %v2024_v14 = vpop.f32.mrb[22].mxu1 }
 0x2c1   : > { %v1056_v15 = vadd.f32 %v2024_v14, %v2475_v10  ;;  %v1047_v16 = vpop.f32.mrb[23].mxu1  ;;  %v1124_v18 = vmax.f32 %v1053_v11, 0.0 }
 0x2c2   : > { %v1048_v17 = vadd.f32 %v2475_v10, %v1047_v16  ;;  %v1122_v20 = vmax.f32 %v1045_v13, 0.0  ;;  %v2512_v16 = vld [vmem:[%s2718_s8] ss:$0 sm:$0xff] }
 0x2c3   : > { %v1125_v19 = vmax.f32 %v1056_v15, 0.0  ;;  %v2125_v15 = vld [vmem:[%s2719_s9] sm:$0xff]  }
 0x2c4   : > { %v1123_v22 = vmax.f32 %v1048_v17, 0.0  ;;  %2065 = vmatprep.subr.bf16.mxu1 %v2125_v15 }
 0x2c5   : > { %v1142_v23 = vpack.c.bf16 %v1125_v19, %v1124_v18  ;;  %2066 = vmatpush3.bf16.msra.mxu1 %v2125_v15 }
 0x2c6   : > { %v1141_v24 = vpack.c.bf16 %v1123_v22, %v1122_v20 }
 0x2c8   : > { %2045 = vmatprep.mubr.msk.bf16.mxu0 %vm1174_vm1, %v1141_v24 }
 0x2c9   : > { %2046 = vmatmul.mubr.msk.bf16.vlgmr.msra.gmra.mrb[40].mxu0 %vm1174_vm1, %v1142_v23 }
 0x2ce   : > { %v2027_v25 = vpop.f32.mrb[24].mxu1 }
 0x2cf   : > { %v1069_v26 = vadd.f32 %v2027_v25, %v2475_v10  ;;  %v1060_v27 = vpop.f32.mrb[25].mxu1 }
 0x2d0   : > { %v1061_v28 = vadd.f32 %v2475_v10, %v1060_v27  ;;  %v2028_v29 = vpop.f32.mrb[26].mxu1 }
 0x2d1   : > { %v1072_v30 = vadd.f32 %v2028_v29, %v2475_v10  ;;  %v1063_v31 = vpop.f32.mrb[27].mxu1  ;;  %v1128_v33 = vmax.f32 %v1069_v26, 0.0 }
 0x2d2   : > { %v1064_v32 = vadd.f32 %v2475_v10, %v1063_v31  ;;  %v1126_v35 = vmax.f32 %v1061_v28, 0.0 }
 0x2d3   : > { %v1129_v34 = vmax.f32 %v1072_v30, 0.0 }
 0x2d4   : > { %v1127_v36 = vmax.f32 %v1064_v32, 0.0 }
 0x2d5   : > { %v1144_v37 = vpack.c.bf16 %v1129_v34, %v1128_v33 }
 0x2d6   : > { %v1143_v38 = vpack.c.bf16 %v1127_v36, %v1126_v35 }
 0x2d8   : > { %2049 = vmatprep.mubr.msk.bf16.mxu0 %vm1174_vm1, %v1143_v38 }
 0x2d9   : > { %2050 = vmatmul.mubr.msk.bf16.gmra.mrb[44].mxu0 %vm1174_vm1, %v1144_v37 }
 0x2de   : > { %v2031_v39 = vpop.f32.mrb[28].mxu1 }
 0x2df   : > { %v1085_v40 = vadd.f32 %v2031_v39, %v2475_v10  ;;  %v1076_v41 = vpop.f32.mrb[29].mxu1 }
 0x2e0   : > { %v1077_v42 = vadd.f32 %v2475_v10, %v1076_v41  ;;  %v2032_v43 = vpop.f32.mrb[30].mxu1 }
 0x2e1   : > { %v1088_v44 = vadd.f32 %v2032_v43, %v2475_v10  ;;  %v1079_v45 = vpop.f32.mrb[31].mxu1  ;;  %v1132_v47 = vmax.f32 %v1085_v40, 0.0 }
 0x2e2   : > { %v1080_v46 = vadd.f32 %v2475_v10, %v1079_v45  ;;  %v1130_v49 = vmax.f32 %v1077_v42, 0.0 }
 0x2e3   : > { %v1133_v48 = vmax.f32 %v1088_v44, 0.0 }
 0x2e4   : > { %v1131_v50 = vmax.f32 %v1080_v46, 0.0 }
 0x2e5   : > { %v1146_v51 = vpack.c.bf16 %v1133_v48, %v1132_v47 }
 0x2e6   : > { %v1145_v52 = vpack.c.bf16 %v1131_v50, %v1130_v49 }
 0x2e8   : > { %2053 = vmatprep.mubr.msk.bf16.mxu0 %vm1174_vm1, %v1145_v52 }
 0x2e9   : > { %2054 = vmatmul.mubr.msk.bf16.gmra.mrb[48].mxu0 %vm1174_vm1, %v1146_v51 }
 0x2ee   : > { %v2035_v53 = vpop.f32.mrb[32].mxu1 }
 0x2ef   : > { %v1101_v54 = vadd.f32 %v2035_v53, %v2475_v10  ;;  %v1092_v55 = vpop.f32.mrb[33].mxu1 }
 0x2f0   : > { %v1093_v56 = vadd.f32 %v2475_v10, %v1092_v55  ;;  %v2036_v57 = vpop.f32.mrb[34].mxu1 }
 0x2f1   : > { %v1104_v58 = vadd.f32 %v2036_v57, %v2475_v10  ;;  %v1095_v59 = vpop.f32.mrb[35].mxu1  ;;  %v1136_v61 = vmax.f32 %v1101_v54, 0.0 }
 0x2f2   : > { %v1096_v60 = vadd.f32 %v2475_v10, %v1095_v59  ;;  %v1134_v63 = vmax.f32 %v1093_v56, 0.0 }
 0x2f3   : > { %v1137_v62 = vmax.f32 %v1104_v58, 0.0 }
 0x2f4   : > { %v1135_v0 = vmax.f32 %v1096_v60, 0.0 }
 0x2f5   : > { %v1148_v1 = vpack.c.bf16 %v1137_v62, %v1136_v61 }
 0x2f6   : > { %v1147_v2 = vpack.c.bf16 %v1135_v0, %v1134_v63 }
 0x2f8   : > { %2057 = vmatprep.mubr.msk.bf16.mxu0 %vm1174_vm1, %v1147_v2 }
 0x2f9   : > { %2058 = vmatmul.mubr.msk.bf16.gmra.mrb[52].mxu0 %vm1174_vm1, %v1148_v1 }
 0x2fc   : > { %v2039_v21 = vpop.f32.mrb[36].mxu1 }
 0x2fd   : > { %v1117_v4 = vadd.f32 %v2039_v21, %v2475_v10  ;;  %v1108_v5 = vpop.f32.mrb[37].mxu1 }
 0x2fe   : > { %v1109_v6 = vadd.f32 %v2475_v10, %v1108_v5  ;;  %v2040_v7 = vpop.f32.mrb[38].mxu1 }
 0x2ff   : > { %v1111_v8 = vpop.f32.mrb[39].mxu1  ;;  %v1140_v3 = vmax.f32 %v1117_v4, 0.0 }
 0x300   : > { %v1112_v9 = vadd.f32 %v2475_v10, %v1111_v8  ;;  %v1138_v11 = vmax.f32 %v1109_v6, 0.0 }
 0x301   : > { %v1150_v14 = vpack.c.bf16 %v1140_v3, %v1140_v3 }
 0x302   : > { %v1139_v12 = vmax.f32 %v1112_v9, 0.0 }
 0x304   : > { %v1149_v13 = vpack.c.bf16 %v1139_v12, %v1138_v11 }
 0x306   : > { %2061 = vmatprep.mubr.msk.bf16.mxu0 %vm1174_vm1, %v1149_v13 }
 0x307   : > { %2062 = vmatmul.mubr.msk.bf16.gmra.mrb[56].mxu0 %vm1174_vm1, %v1150_v14 }
 0x39c   : > { %v2047_v10 = vpop.f32.mrb[40].mxu0 }
 0x39d   : > { %v1248_v17 = vadd.f32 %v2047_v10, %v2512_v16  ;;  %v1239_v18 = vpop.f32.mrb[41].mxu0 }
 0x39e   : > { %v1240_v19 = vadd.f32 %v2512_v16, %v1239_v18  ;;  %v2048_v20 = vpop.f32.mrb[42].mxu0 }
 0x39f   : > { %v1251_v22 = vadd.f32 %v2048_v20, %v2512_v16  ;;  %v1242_v23 = vpop.f32.mrb[43].mxu0  ;;  %v1319_v25 = vmax.f32 %v1248_v17, 0.0 }
 0x3a0   : > { %v1243_v24 = vadd.f32 %v2512_v16, %v1242_v23  ;;  %v1317_v27 = vmax.f32 %v1240_v19, 0.0 }
 0x3a1   : > { %v1320_v26 = vmax.f32 %v1251_v22, 0.0  ;;  %v1831_v22 = vld [vmem:[%s2720_s10] ss:$0 sm:$0xff] }
 0x3a2   : > { %v1318_v28 = vmax.f32 %v1243_v24, 0.0 }
 0x3a3   : > { %v1337_v29 = vpack.c.bf16 %v1320_v26, %v1319_v25 }
 0x3a4   : > { %v1336_v30 = vpack.c.bf16 %v1318_v28, %v1317_v27 }
 0x3a6   : > { %2067 = vmatprep.mubr.msk.bf16.mxu1 %vm1361_vm2, %v1336_v30 }
 0x3a7   : > { %2068 = vmatmul.mubr.msk.bf16.vlgmr.msra.gmra.mrb[40].mxu1 %vm1361_vm2, %v1337_v29 }
 0x3ac   : > { %v2051_v31 = vpop.f32.mrb[44].mxu0 }
 0x3ad   : > { %v1264_v32 = vadd.f32 %v2051_v31, %v2512_v16  ;;  %v1255_v33 = vpop.f32.mrb[45].mxu0 }
 0x3ae   : > { %v1256_v34 = vadd.f32 %v2512_v16, %v1255_v33  ;;  %v2052_v35 = vpop.f32.mrb[46].mxu0 }
 0x3af   : > { %v1267_v36 = vadd.f32 %v2052_v35, %v2512_v16  ;;  %v1258_v37 = vpop.f32.mrb[47].mxu0  ;;  %v1323_v39 = vmax.f32 %v1264_v32, 0.0 }
 0x3b0   : > { %v1259_v38 = vadd.f32 %v2512_v16, %v1258_v37  ;;  %v1321_v41 = vmax.f32 %v1256_v34, 0.0 }
 0x3b1   : > { %v1324_v40 = vmax.f32 %v1267_v36, 0.0 }
 0x3b2   : > { %v1322_v42 = vmax.f32 %v1259_v38, 0.0 }
 0x3b3   : > { %v1339_v43 = vpack.c.bf16 %v1324_v40, %v1323_v39 }
 0x3b4   : > { %v1338_v44 = vpack.c.bf16 %v1322_v42, %v1321_v41 }
 0x3b6   : > { %2071 = vmatprep.mubr.msk.bf16.mxu1 %vm1361_vm2, %v1338_v44 }
 0x3b7   : > { %2072 = vmatmul.mubr.msk.bf16.gmra.mrb[44].mxu1 %vm1361_vm2, %v1339_v43 }
 0x3bc   : > { %v2055_v45 = vpop.f32.mrb[48].mxu0 }
 0x3bd   : > { %v1280_v46 = vadd.f32 %v2055_v45, %v2512_v16  ;;  %v1271_v47 = vpop.f32.mrb[49].mxu0 }
 0x3be   : > { %v1272_v48 = vadd.f32 %v2512_v16, %v1271_v47  ;;  %v2056_v49 = vpop.f32.mrb[50].mxu0 }
 0x3bf   : > { %v1283_v50 = vadd.f32 %v2056_v49, %v2512_v16  ;;  %v1274_v51 = vpop.f32.mrb[51].mxu0  ;;  %v1327_v53 = vmax.f32 %v1280_v46, 0.0 }
 0x3c0   : > { %v1275_v52 = vadd.f32 %v2512_v16, %v1274_v51  ;;  %v1325_v55 = vmax.f32 %v1272_v48, 0.0 }
 0x3c1   : > { %v1328_v54 = vmax.f32 %v1283_v50, 0.0 }
 0x3c2   : > { %v1326_v56 = vmax.f32 %v1275_v52, 0.0 }
 0x3c3   : > { %v1341_v57 = vpack.c.bf16 %v1328_v54, %v1327_v53 }
 0x3c4   : > { %v1340_v58 = vpack.c.bf16 %v1326_v56, %v1325_v55 }
 0x3c6   : > { %2075 = vmatprep.mubr.msk.bf16.mxu1 %vm1361_vm2, %v1340_v58 }
 0x3c7   : > { %2076 = vmatmul.mubr.msk.bf16.gmra.mrb[48].mxu1 %vm1361_vm2, %v1341_v57 }
 0x3cc   : > { %v2059_v59 = vpop.f32.mrb[52].mxu0 }
 0x3cd   : > { %v1296_v60 = vadd.f32 %v2059_v59, %v2512_v16  ;;  %v1287_v61 = vpop.f32.mrb[53].mxu0 }
 0x3ce   : > { %v1288_v62 = vadd.f32 %v2512_v16, %v1287_v61  ;;  %v2060_v63 = vpop.f32.mrb[54].mxu0 }
 0x3cf   : > { %v1299_v0 = vadd.f32 %v2060_v63, %v2512_v16  ;;  %v1290_v1 = vpop.f32.mrb[55].mxu0  ;;  %v1331_v21 = vmax.f32 %v1296_v60, 0.0 }
 0x3d0   : > { %v1291_v2 = vadd.f32 %v2512_v16, %v1290_v1  ;;  %v1329_v5 = vmax.f32 %v1288_v62, 0.0 }
 0x3d1   : > { %v1332_v4 = vmax.f32 %v1299_v0, 0.0 }
 0x3d2   : > { %v1330_v6 = vmax.f32 %v1291_v2, 0.0 }
 0x3d3   : > { %v1343_v7 = vpack.c.bf16 %v1332_v4, %v1331_v21 }
 0x3d4   : > { %v1342_v8 = vpack.c.bf16 %v1330_v6, %v1329_v5 }
 0x3d6   : > { %2079 = vmatprep.mubr.msk.bf16.mxu1 %vm1361_vm2, %v1342_v8 }
 0x3d7   : > { %2080 = vmatmul.mubr.msk.bf16.gmra.mrb[52].mxu1 %vm1361_vm2, %v1343_v7 }
 0x3da   : > { %v2063_v9 = vpop.f32.mrb[56].mxu0 }
 0x3db   : > { %v1312_v3 = vadd.f32 %v2063_v9, %v2512_v16  ;;  %v1303_v11 = vpop.f32.mrb[57].mxu0 }
 0x3dc   : > { %v1304_v12 = vadd.f32 %v2512_v16, %v1303_v11  ;;  %v2064_v13 = vpop.f32.mrb[58].mxu0 }
 0x3dd   : > { %v1306_v14 = vpop.f32.mrb[59].mxu0  ;;  %v1335_v10 = vmax.f32 %v1312_v3, 0.0 }
 0x3de   : > { %v1307_v15 = vadd.f32 %v2512_v16, %v1306_v14  ;;  %v1333_v17 = vmax.f32 %v1304_v12, 0.0 }
 0x3df   : > { %v1345_v20 = vpack.c.bf16 %v1335_v10, %v1335_v10 }
 0x3e0   : > { %v1334_v18 = vmax.f32 %v1307_v15, 0.0 }
 0x3e2   : > { %v1344_v19 = vpack.c.bf16 %v1334_v18, %v1333_v17 }
 0x3e4   : > { %2083 = vmatprep.mubr.msk.bf16.mxu1 %vm1361_vm2, %v1344_v19 }
 0x3e5   : > { %2084 = vmatmul.mubr.msk.bf16.gmra.mrb[56].mxu1 %vm1361_vm2, %v1345_v20 }
 0x47a   : > { %v2069_v23 = vpop.f32.mrb[40].mxu1 }
 0x47b   : > { %v1435_v24 = vadd.f32 %v2069_v23, %v1831_v22  ;;  %v1426_v25 = vpop.f32.mrb[41].mxu1 }
 0x47c   : > { %v1427_v26 = vadd.f32 %v1831_v22, %v1426_v25  ;;  %v2070_v27 = vpop.f32.mrb[42].mxu1 }
 0x47d   : > { %1508 = vmax.xlane.f32.xlu1 %v1435_v24  ;;  %v1429_v16 = vpop.f32.mrb[43].mxu1  ;;  %v1438_v28 = vadd.f32 %v2070_v27, %v1831_v22 }
 0x47e   : > { %1504 = vmax.xlane.f32.xlu0 %v1427_v26  ;;  %v1430_v29 = vadd.f32 %v1831_v22, %v1429_v16 }
 0x481   : > { %1510 = vmax.xlane.f32.xlu1 %v1438_v28 }
 0x482   : > { %1506 = vmax.xlane.f32.xlu0 %v1430_v29 }
 0x48a   : > { %v2073_v30 = vpop.f32.mrb[44].mxu1 }
 0x48b   : > { %v2546_v31 = vadd.f32 %v2073_v30, %v1831_v22  ;;  %v1442_v32 = vpop.f32.mrb[45].mxu1 }
 0x48c   : > { %v2074_v33 = vpop.f32.mrb[46].mxu1  ;;  %v2551_v36 = vadd.f32 %v1831_v22, %v1442_v32 }
 0x48d   : > { %v2548_v34 = vadd.f32 %v2074_v33, %v1831_v22  ;;  %v1445_v35 = vpop.f32.mrb[47].mxu1  ;;  %1516 = vmax.xlane.f32.xlu0 %v2546_v31 }
 0x48e   : > { %v2554_v37 = vadd.f32 %v1831_v22, %v1445_v35 }
 0x48f   : > { %1518 = vmax.xlane.f32.xlu1 %v2548_v34 }
 0x491   : > { %1512 = vmax.xlane.f32.xlu0 %v2551_v36 }
 0x493   : > { %1514 = vmax.xlane.f32.xlu1 %v2554_v37 }
 0x49a   : > { %v2077_v38 = vpop.f32.mrb[48].mxu1 }
 0x49b   : > { %v2558_v39 = vadd.f32 %v2077_v38, %v1831_v22  ;;  %v1458_v40 = vpop.f32.mrb[49].mxu1 }
 0x49c   : > { %v2078_v41 = vpop.f32.mrb[50].mxu1  ;;  %v2563_v44 = vadd.f32 %v1831_v22, %v1458_v40 }
 0x49d   : > { %v2560_v42 = vadd.f32 %v2078_v41, %v1831_v22  ;;  %v1461_v43 = vpop.f32.mrb[51].mxu1  ;;  %1524 = vmax.xlane.f32.xlu0 %v2558_v39 }
 0x49e   : > { %v2566_v45 = vadd.f32 %v1831_v22, %v1461_v43 }
 0x49f   : > { %1526 = vmax.xlane.f32.xlu1 %v2560_v42 }
 0x4a1   : > { %1520 = vmax.xlane.f32.xlu0 %v2563_v44 }
 0x4a3   : > { %1522 = vmax.xlane.f32.xlu1 %v2566_v45 }
 0x4aa   : > { %v2081_v46 = vpop.f32.mrb[52].mxu1 }
 0x4ab   : > { %v2570_v47 = vadd.f32 %v2081_v46, %v1831_v22  ;;  %v1474_v48 = vpop.f32.mrb[53].mxu1 }
 0x4ac   : > { %v2082_v49 = vpop.f32.mrb[54].mxu1  ;;  %v2575_v52 = vadd.f32 %v1831_v22, %v1474_v48 }
 0x4ad   : > { %v2572_v50 = vadd.f32 %v2082_v49, %v1831_v22  ;;  %v1477_v51 = vpop.f32.mrb[55].mxu1  ;;  %1532 = vmax.xlane.f32.xlu0 %v2570_v47 }
 0x4ae   : > { %v2578_v53 = vadd.f32 %v1831_v22, %v1477_v51 }
 0x4af   : > { %1534 = vmax.xlane.f32.xlu1 %v2572_v50 }
 0x4b1   : > { %1528 = vmax.xlane.f32.xlu0 %v2575_v52 }
 0x4b3   : > { %1530 = vmax.xlane.f32.xlu1 %v2578_v53 }
 0x4b8   : > { %v2085_v54 = vpop.f32.mrb[56].mxu1 }
 0x4b9   : > { %v1490_v55 = vpop.f32.mrb[57].mxu1  ;;  %v2587_v60 = vadd.f32 %v2085_v54, %v1831_v22 }
 0x4ba   : > { %v2582_v56 = vadd.f32 %v1831_v22, %v1490_v55  ;;  %v2086_v57 = vpop.f32.mrb[58].mxu1 }
 0x4bb   : > { %v1493_v58 = vpop.f32.mrb[59].mxu1 }
 0x4bc   : > { %v2584_v59 = vadd.f32 %v1831_v22, %v1493_v58  ;;  %1536 = vmax.xlane.f32.xlu0 %v2582_v56 }
 0x4be   : > { %1538 = vmax.xlane.f32.xlu1 %v2584_v59 }
 0x4c0   : > { %1540 = vmax.xlane.f32.xlu0 %v2587_v60 }
 0x50a   : > { %v1509_v61 = vpop.xlane.xlu1 %1508 }
 0x50b   : > { %v2591_v62 = vsub.f32 %v1435_v24, %v1509_v61  ;;  %v1505_v63 = vpop.xlane.xlu0 %1504 }
 0x50c   : > { %v2593_v0 = vsub.f32 %v1427_v26, %v1505_v63 }
 0x50d   : > { %v1565_v1 = vmul.f32 1.442695, %v2591_v62 }
 0x50e   : > { %v1561_v2 = vmul.f32 1.442695, %v2593_v0  ;;  %v1511_v21 = vpop.xlane.xlu1 %1510 }
 0x50f   : > { %2126 = vpow2.f32 %v1565_v1  ;;  %v2597_v4 = vsub.f32 %v1438_v28, %v1511_v21  ;;  %v1507_v5 = vpop.xlane.xlu0 %1506 }
 0x510   : > { %v2599_v6 = vsub.f32 %v1430_v29, %v1507_v5  ;;  %2128 = vpow2.f32 %v1561_v2 }
 0x511   : > { %v1567_v7 = vmul.f32 1.442695, %v2597_v4 }
 0x512   : > { %v1563_v8 = vmul.f32 1.442695, %v2599_v6 }
 0x513   : > { %2130 = vpow2.f32 %v1567_v7 }
 0x514   : > { %2132 = vpow2.f32 %v1563_v8 }
 0x519   : > { %v2127_v9 = vpop.eup %2126 }
 0x51a   : > { %1603 = vadd.xlane.f32.xlu1 %v2127_v9  ;;  %v1517_v3 = vpop.xlane.xlu0 %1516  ;;  %v2129_v12 = vpop.eup %2128 }
 0x51b   : > { %v2604_v11 = vsub.f32 %v2546_v31, %v1517_v3 }
 0x51c   : > { %v1519_v13 = vpop.xlane.xlu1 %1518 }
 0x51d   : > { %v2131_v14 = vpop.eup %2130  ;;  %v1573_v15 = vmul.f32 1.442695, %v2604_v11  ;;  %v2608_v10 = vsub.f32 %v2548_v34, %v1519_v13 }
 0x51e   : > { %1605 = vadd.xlane.f32.xlu0 %v2131_v14  ;;  %1599 = vadd.xlane.f32.xlu1 %v2129_v12  ;;  %v1513_v17 = vpop.xlane.xlu0 %1512  ;;  %v2133_v22 = vpop.eup %2132 }
 0x51f   : > { %2134 = vpow2.f32 %v1573_v15  ;;  %v1575_v18 = vmul.f32 1.442695, %v2608_v10  ;;  %v2612_v19 = vsub.f32 %v2551_v36, %v1513_v17 }
 0x520   : > { %v1515_v20 = vpop.xlane.xlu1 %1514 }
 0x521   : > { %2136 = vpow2.f32 %v1575_v18  ;;  %v1569_v23 = vmul.f32 1.442695, %v2612_v19  ;;  %v2616_v24 = vsub.f32 %v2554_v37, %v1515_v20 }
 0x522   : > { %1601 = vadd.xlane.f32.xlu0 %v2133_v22 }
 0x523   : > { %2138 = vpow2.f32 %v1569_v23  ;;  %v1571_v25 = vmul.f32 1.442695, %v2616_v24 }
 0x525   : > { %2140 = vpow2.f32 %v1571_v25 }
 0x529   : > { %v2135_v26 = vpop.eup %2134 }
 0x52a   : > { %1611 = vadd.xlane.f32.xlu1 %v2135_v26  ;;  %v1525_v27 = vpop.xlane.xlu0 %1524 }
 0x52b   : > { %v2137_v16 = vpop.eup %2136  ;;  %v2620_v28 = vsub.f32 %v2558_v39, %v1525_v27 }
 0x52c   : > { %v1527_v29 = vpop.xlane.xlu1 %1526  ;;  %1613 = vadd.xlane.f32.xlu0 %v2137_v16 }
 0x52d   : > { %v2139_v30 = vpop.eup %2138  ;;  %v1581_v31 = vmul.f32 1.442695, %v2620_v28  ;;  %v2624_v32 = vsub.f32 %v2560_v42, %v1527_v29 }
 0x52e   : > { %1607 = vadd.xlane.f32.xlu1 %v2139_v30  ;;  %v1521_v33 = vpop.xlane.xlu0 %1520 }
 0x52f   : > { %v2141_v34 = vpop.eup %2140  ;;  %2142 = vpow2.f32 %v1581_v31  ;;  %v1583_v35 = vmul.f32 1.442695, %v2624_v32  ;;  %v2628_v36 = vsub.f32 %v2563_v44, %v1521_v33 }
 0x530   : > { %v1523_v37 = vpop.xlane.xlu1 %1522  ;;  %1609 = vadd.xlane.f32.xlu0 %v2141_v34 }
 0x531   : > { %2144 = vpow2.f32 %v1583_v35  ;;  %v1577_v38 = vmul.f32 1.442695, %v2628_v36  ;;  %v2632_v39 = vsub.f32 %v2566_v45, %v1523_v37 }
 0x533   : > { %2146 = vpow2.f32 %v1577_v38  ;;  %v1579_v40 = vmul.f32 1.442695, %v2632_v39 }
 0x535   : > { %2148 = vpow2.f32 %v1579_v40 }
 0x539   : > { %v2143_v41 = vpop.eup %2142 }
 0x53a   : > { %1619 = vadd.xlane.f32.xlu1 %v2143_v41  ;;  %v1533_v42 = vpop.xlane.xlu0 %1532 }
 0x53b   : > { %v2145_v43 = vpop.eup %2144  ;;  %v2636_v46 = vsub.f32 %v2570_v47, %v1533_v42 }
 0x53c   : > { %v1535_v44 = vpop.xlane.xlu1 %1534  ;;  %1621 = vadd.xlane.f32.xlu0 %v2145_v43 }
 0x53d   : > { %v2147_v48 = vpop.eup %2146  ;;  %v1589_v49 = vmul.f32 1.442695, %v2636_v46  ;;  %v2640_v51 = vsub.f32 %v2572_v50, %v1535_v44 }
 0x53e   : > { %1615 = vadd.xlane.f32.xlu1 %v2147_v48  ;;  %v1529_v45 = vpop.xlane.xlu0 %1528 }
 0x53f   : > { %v2149_v54 = vpop.eup %2148  ;;  %2150 = vpow2.f32 %v1589_v49  ;;  %v1591_v55 = vmul.f32 1.442695, %v2640_v51  ;;  %v2644_v57 = vsub.f32 %v2575_v52, %v1529_v45 }
 0x540   : > { %v1531_v58 = vpop.xlane.xlu1 %1530  ;;  %1617 = vadd.xlane.f32.xlu0 %v2149_v54 }
 0x541   : > { %2152 = vpow2.f32 %v1591_v55  ;;  %v1585_v47 = vmul.f32 1.442695, %v2644_v57  ;;  %v2648_v61 = vsub.f32 %v2578_v53, %v1531_v58 }
 0x543   : > { %2154 = vpow2.f32 %v1585_v47  ;;  %v1587_v50 = vmul.f32 1.442695, %v2648_v61 }
 0x545   : > { %2156 = vpow2.f32 %v1587_v50 }
 0x549   : > { %v2151_v63 = vpop.eup %2150  ;;  %v1537_v1 = vpop.xlane.xlu0 %1536 }
 0x54a   : > { %v2652_v2 = vsub.f32 %v2582_v56, %v1537_v1  ;;  %1627 = vadd.xlane.f32.xlu1 %v2151_v63 }
 0x54b   : > { %v2153_v52 = vpop.eup %2152  ;;  %v1539_v21 = vpop.xlane.xlu1 %1538 }
 0x54c   : > { %v1593_v5 = vmul.f32 1.442695, %v2652_v2  ;;  %v2656_v7 = vsub.f32 %v2584_v59, %v1539_v21  ;;  %1629 = vadd.xlane.f32.xlu0 %v2153_v52 }
 0x54d   : > { %v2155_v53 = vpop.eup %2154  ;;  %v1541_v8 = vpop.xlane.xlu0 %1540 }
 0x54e   : > { %2158 = vpow2.f32 %v1593_v5  ;;  %v1595_v9 = vmul.f32 1.442695, %v2656_v7  ;;  %v2660_v3 = vsub.f32 %v2587_v60, %v1541_v8  ;;  %1623 = vadd.xlane.f32.xlu1 %v2155_v53 }
 0x54f   : > { %v2157_v56 = vpop.eup %2156 }
 0x550   : > { %2160 = vpow2.f32 %v1595_v9  ;;  %v1597_v12 = vmul.f32 1.442695, %v2660_v3  ;;  %1625 = vadd.xlane.f32.xlu0 %v2157_v56 }
 0x552   : > { %2162 = vpow2.f32 %v1597_v12 }
 0x558   : > { %v2159_v13 = vpop.eup %2158 }
 0x559   : > { %1631 = vadd.xlane.f32.xlu1 %v2159_v13 }
 0x55a   : > { %v2161_v59 = vpop.eup %2160 }
 0x55b   : > { %1633 = vadd.xlane.f32.xlu0 %v2161_v59 }
 0x55c   : > { %v2163_v14 = vpop.eup %2162 }
 0x55d   : > { %1635 = vadd.xlane.f32.xlu1 %v2163_v14 }
 0x5a7   : > { %v1604_v15 = vpop.xlane.xlu1 %1603 }
 0x5a8   : > { %2164 = vlog2.f32 %v1604_v15 }
 0x5ab   : > { %v1600_v17 = vpop.xlane.xlu1 %1599  ;;  %v1606_v18 = vpop.xlane.xlu0 %1605 }
 0x5ac   : > { %2166 = vlog2.f32 %v1600_v17 }
 0x5ad   : > { %2168 = vlog2.f32 %v1606_v18 }
 0x5af   : > { %v1602_v60 = vpop.xlane.xlu0 %1601 }
 0x5b0   : > { %2170 = vlog2.f32 %v1602_v60 }
 0x5b2   : > { %v2165_v20 = vpop.eup %2164 }
 0x5b3   : > { %v1642_v22 = vmul.f32 0.6931472, %v2165_v20 }
 0x5b5   : > { %v1677_v23 = vsub.f32 %v2591_v62, %v1642_v22 }
 0x5b6   : > { %v2167_v25 = vpop.eup %2166 }
 0x5b7   : > { %v2169_v26 = vpop.eup %2168  ;;  %1696 = vst [vmem:[%s2667_s13 + $0x10] sm:$0xff] %v1677_v23  ;;  %v1638_v27 = vmul.f32 0.6931472, %v2167_v25  ;;  %v1612_v16 = vpop.xlane.xlu1 %1611 }
 0x5b8   : > { %v1644_v29 = vmul.f32 0.6931472, %v2169_v26  ;;  %2172 = vlog2.f32 %v1612_v16 }
 0x5b9   : > { %v1675_v30 = vsub.f32 %v2593_v0, %v1638_v27  ;;  %v1614_v31 = vpop.xlane.xlu0 %1613 }
 0x5ba   : > { %v2171_v33 = vpop.eup %2170  ;;  %v1678_v34 = vsub.f32 %v2597_v4, %v1644_v29  ;;  %2174 = vlog2.f32 %v1614_v31 }
 0x5bb   : > { %1694 = vst [vmem:[%s2667_s13] sm:$0xff] %v1675_v30  ;;  %v1640_v35 = vmul.f32 0.6931472, %v2171_v33  ;;  %v1608_v62 = vpop.xlane.xlu1 %1607 }
 0x5bc   : > { %1697 = vst [vmem:[%s2667_s13 + $0x18] sm:$0xff] %v1678_v34  ;;  %2176 = vlog2.f32 %v1608_v62 }
 0x5bd   : > { %v1676_v37 = vsub.f32 %v2599_v6, %v1640_v35  ;;  %v1610_v38 = vpop.xlane.xlu0 %1609 }
 0x5be   : > { %2178 = vlog2.f32 %v1610_v38 }
 0x5bf   : > { %1695 = vst [vmem:[%s2667_s13 + $0x8] sm:$0xff] %v1676_v37 }
 0x5c2   : > { %v2173_v40 = vpop.eup %2172 }
 0x5c3   : > { %v1650_v41 = vmul.f32 0.6931472, %v2173_v40 }
 0x5c4   : > { %v2175_v0 = vpop.eup %2174 }
 0x5c5   : > { %v1681_v42 = vsub.f32 %v2604_v11, %v1650_v41  ;;  %v1652_v4 = vmul.f32 0.6931472, %v2175_v0 }
 0x5c6   : > { %v2177_v43 = vpop.eup %2176 }
 0x5c7   : > { %1700 = vst [vmem:[%s2667_s13 + $0x30] sm:$0xff] %v1681_v42  ;;  %v1682_v44 = vsub.f32 %v2608_v10, %v1652_v4  ;;  %v1646_v48 = vmul.f32 0.6931472, %v2177_v43  ;;  %v1620_v49 = vpop.xlane.xlu1 %1619 }
 0x5c8   : > { %v2179_v45 = vpop.eup %2178  ;;  %2180 = vlog2.f32 %v1620_v49 }
 0x5c9   : > { %1701 = vst [vmem:[%s2667_s13 + $0x38] sm:$0xff] %v1682_v44  ;;  %v1679_v6 = vsub.f32 %v2612_v19, %v1646_v48  ;;  %v1648_v54 = vmul.f32 0.6931472, %v2179_v45  ;;  %v1622_v55 = vpop.xlane.xlu0 %1621 }
 0x5ca   : > { %2182 = vlog2.f32 %v1622_v55 }
 0x5cb   : > { %1698 = vst [vmem:[%s2667_s13 + $0x20] sm:$0xff] %v1679_v6  ;;  %v1680_v11 = vsub.f32 %v2616_v24, %v1648_v54  ;;  %v1616_v58 = vpop.xlane.xlu1 %1615 }
 0x5cc   : > { %2184 = vlog2.f32 %v1616_v58 }
 0x5cd   : > { %1699 = vst [vmem:[%s2667_s13 + $0x28] sm:$0xff] %v1680_v11  ;;  %v1618_v47 = vpop.xlane.xlu0 %1617 }
 0x5ce   : > { %2186 = vlog2.f32 %v1618_v47 }
 0x5d2   : > { %v2181_v10 = vpop.eup %2180 }
 0x5d3   : > { %v1658_v50 = vmul.f32 0.6931472, %v2181_v10 }
 0x5d4   : > { %v2183_v63 = vpop.eup %2182 }
 0x5d5   : > { %v1685_v1 = vsub.f32 %v2620_v28, %v1658_v50  ;;  %v1660_v19 = vmul.f32 0.6931472, %v2183_v63 }
 0x5d6   : > { %v2185_v52 = vpop.eup %2184 }
 0x5d7   : > { %1704 = vst [vmem:[%s2667_s13 + $0x50] sm:$0xff] %v1685_v1  ;;  %v1686_v21 = vsub.f32 %v2624_v32, %v1660_v19  ;;  %v1654_v5 = vmul.f32 0.6931472, %v2185_v52  ;;  %v1628_v24 = vpop.xlane.xlu1 %1627 }
 0x5d8   : > { %v2187_v53 = vpop.eup %2186  ;;  %2188 = vlog2.f32 %v1628_v24 }
 0x5d9   : > { %1705 = vst [vmem:[%s2667_s13 + $0x58] sm:$0xff] %v1686_v21  ;;  %v1683_v8 = vsub.f32 %v2628_v36, %v1654_v5  ;;  %v1656_v9 = vmul.f32 0.6931472, %v2187_v53  ;;  %v1630_v56 = vpop.xlane.xlu0 %1629 }
 0x5da   : > { %2190 = vlog2.f32 %v1630_v56 }
 0x5db   : > { %1702 = vst [vmem:[%s2667_s13 + $0x40] sm:$0xff] %v1683_v8  ;;  %v1684_v28 = vsub.f32 %v2632_v39, %v1656_v9  ;;  %v1624_v12 = vpop.xlane.xlu1 %1623 }
 0x5dc   : > { %2192 = vlog2.f32 %v1624_v12 }
 0x5dd   : > { %1703 = vst [vmem:[%s2667_s13 + $0x48] sm:$0xff] %v1684_v28  ;;  %v1626_v13 = vpop.xlane.xlu0 %1625 }
 0x5de   : > { %2194 = vlog2.f32 %v1626_v13 }
 0x5e2   : > { %v2189_v32 = vpop.eup %2188 }
 0x5e3   : > { %v1666_v59 = vmul.f32 0.6931472, %v2189_v32 }
 0x5e4   : > { %v2191_v14 = vpop.eup %2190 }
 0x5e5   : > { %v1689_v15 = vsub.f32 %v2636_v46, %v1666_v59  ;;  %v1668_v36 = vmul.f32 0.6931472, %v2191_v14 }
 0x5e6   : > { %v2193_v17 = vpop.eup %2192  ;;  %v1632_v18 = vpop.xlane.xlu1 %1631 }
 0x5e7   : > { %1708 = vst [vmem:[%s2667_s13 + $0x70] sm:$0xff] %v1689_v15  ;;  %v1690_v60 = vsub.f32 %v2640_v51, %v1668_v36  ;;  %v1662_v39 = vmul.f32 0.6931472, %v2193_v17  ;;  %2196 = vlog2.f32 %v1632_v18 }
 0x5e8   : > { %v2195_v20 = vpop.eup %2194  ;;  %v1634_v22 = vpop.xlane.xlu0 %1633 }
 0x5e9   : > { %1709 = vst [vmem:[%s2667_s13 + $0x78] sm:$0xff] %v1690_v60  ;;  %v1687_v23 = vsub.f32 %v2644_v57, %v1662_v39  ;;  %v1664_v25 = vmul.f32 0.6931472, %v2195_v20  ;;  %2198 = vlog2.f32 %v1634_v22 }
 0x5ea   : > { %v1636_v26 = vpop.xlane.xlu1 %1635 }
 0x5eb   : > { %1706 = vst [vmem:[%s2667_s13 + $0x60] sm:$0xff] %v1687_v23  ;;  %v1688_v46 = vsub.f32 %v2648_v61, %v1664_v25  ;;  %2200 = vlog2.f32 %v1636_v26 }
 0x5ed   : > { %1707 = vst [vmem:[%s2667_s13 + $0x68] sm:$0xff] %v1688_v46 }
 0x5f1   : > { %v2197_v27 = vpop.eup %2196 }
 0x5f2   : > { %v1670_v51 = vmul.f32 0.6931472, %v2197_v27 }
 0x5f3   : > { %v2199_v16 = vpop.eup %2198 }
 0x5f4   : > { %v1691_v29 = vsub.f32 %v2652_v2, %v1670_v51  ;;  %v1672_v30 = vmul.f32 0.6931472, %v2199_v16 }
 0x5f5   : > { %v2201_v31 = vpop.eup %2200 }
 0x5f6   : > { %1710 = vst [vmem:[%s2667_s13 + $0x80] sm:$0xff] %v1691_v29  ;;  %v1692_v57 = vsub.f32 %v2656_v7, %v1672_v30  ;;  %v1674_v33 = vmul.f32 0.6931472, %v2201_v31 }
 0x5f8   : > { %1711 = vst [vmem:[%s2667_s13 + $0x88] sm:$0xff] %v1692_v57  ;;  %v1693_v34 = vsub.f32 %v2660_v3, %v1674_v33 }
 0x5fa   : > { %1712 = vst [vmem:[%s2667_s13 + $0x90] sm:$0xff] %v1693_v34 }
 0x5fb PF: > { %s21_s17 = sadd.s32 1, %s2208_s17  }
 0x5fc   : > { %p18_p4 = scmp.ge.s32.totalorder %s21_s17, 4  }
 0x5fe   :  { %20 = sbr.rel (!%p18_p4) target bundleno = 1 (0x1), region = 94 }

</bundles_post_ra>
